<compile_context>
chip_gen: v7x
topology: tpu7x:2x2x1
jax: 0.10.0
libtpu: 0.0.40
codegen_flags: <defaults>
</compile_context>

<pallas_src>
import functools

import jax
import jax.numpy as jnp
from jax.experimental import pallas as pl
from jax.experimental.pallas import tpu as pltpu


def _ls_ce_kernel(preds_ref, target_ref, smooth_ref, nll_ref, *, n_rows):
    """Partial sums of the smoothing term and the NLL term for one row tile."""
    tile_n, num_classes = preds_ref.shape

    x = preds_ref[...].astype(jnp.float32)   # (TILE_N, C)
    t = target_ref[...]                      # (TILE_N, 1) int32

    # Row-validity mask (tail tile may contain padded rows).
    row0 = pl.program_id(0) * tile_n
    rows = row0 + jax.lax.broadcasted_iota(jnp.int32, (tile_n, 1), 0)
    valid = rows < n_rows                    # (TILE_N, 1)

    # Fused pass: row max, sum(exp(x - m)), sum(x), masked target logit.
    m = jnp.max(x, axis=-1, keepdims=True)                        # (TILE_N, 1)
    sum_exp = jnp.sum(jnp.exp(x - m), axis=-1, keepdims=True)     # (TILE_N, 1)
    lse = jnp.log(sum_exp) + m                                    # (TILE_N, 1)
    sum_x = jnp.sum(x, axis=-1, keepdims=True)                    # (TILE_N, 1)

    cls = jax.lax.broadcasted_iota(jnp.int32, (tile_n, num_classes), 1)
    x_tgt = jnp.sum(jnp.where(cls == t, x, 0.0), axis=-1, keepdims=True)

    row_smooth = num_classes * lse - sum_x   # = -sum_c log p[i, c]
    row_nll = lse - x_tgt                    # = -log p[i, target_i]

    part_smooth = jnp.sum(jnp.where(valid, row_smooth, 0.0))
    part_nll = jnp.sum(jnp.where(valid, row_nll, 0.0))

    # Lane-dense (1, 8, 128) per-tile partials -> unmasked vector stores.
    smooth_ref[...] = jnp.zeros(smooth_ref.shape, jnp.float32) + part_smooth
    nll_ref[...] = jnp.zeros(nll_ref.shape, jnp.float32) + part_nll


def _round_up(x, m):
    return (x + m - 1) // m * m


def label_smoothing_cross_entropy(preds, target, epsilon=0.1, reduction="mean"):
    """Matches LabelSmoothingCrossEntropy.forward(preds, target).

    preds:  [N, C] float logits
    target: [N]    int class indices
    Returns a scalar float32 loss (for 'mean' / 'sum').
    """
    N, C = preds.shape
    itemsize = jnp.dtype(preds.dtype).itemsize

    # Row tile: keep a double-buffered input tile well under scoped VMEM on
    # every generation (conservative for v7x), but large enough to hide the
    # fixed per-grid-step overhead.
    budget_bytes = 8 * 1024 * 1024            # per in-flight input buffer
    tile_n = max(8, min(512, budget_bytes // max(1, C * itemsize)))
    tile_n = max(8, (tile_n // 8) * 8)
    tile_n = min(tile_n, _round_up(N, 8))

    num_tiles = (N + tile_n - 1) // tile_n
    n_pad = num_tiles * tile_n

    if n_pad != N:
        preds = jnp.pad(preds, ((0, n_pad - N), (0, 0)))
        target = jnp.pad(target, (0, n_pad - N))
    target2d = target.astype(jnp.int32).reshape(n_pad, 1)

    kernel = functools.partial(_ls_ce_kernel, n_rows=N)

    smooth_parts, nll_parts = pl.pallas_call(
        kernel,
        grid=(num_tiles,),
        in_specs=[
            pl.BlockSpec((tile_n, C), lambda i: (i, 0)),
            # TODO(synk): target would ideally ride the scalar (SMEM) path;
            # the (TILE_N, 1) int32 VMEM block is lane-padded but tiny vs preds.
            pl.BlockSpec((tile_n, 1), lambda i: (i, 0)),
        ],
        out_specs=(
            pl.BlockSpec((1, 8, 128), lambda i: (i, 0, 0)),
            pl.BlockSpec((1, 8, 128), lambda i: (i, 0, 0)),
        ),
        out_shape=(
            jax.ShapeDtypeStruct((num_tiles, 8, 128), jnp.float32),
            jax.ShapeDtypeStruct((num_tiles, 8, 128), jnp.float32),
        ),
        compiler_params=pltpu.CompilerParams(
            dimension_semantics=("parallel",),
        ),
    )(preds, target2d)

    total_smooth = jnp.sum(smooth_parts[:, 0, 0])   # sum_i -sum_c log p[i, c]
    total_nll = jnp.sum(nll_parts[:, 0, 0])         # sum_i -log p[i, y_i]

    if reduction == "mean":
        loss = total_smooth / N
        nll = total_nll / N
    elif reduction == "sum":
        loss = total_smooth
        nll = total_nll
    else:
        # TODO(synk): 'none' reduction returns per-row vectors; needs a
        # lane-dense per-row output layout, not implemented here.
        raise NotImplementedError("only 'mean' and 'sum' reductions are implemented")

    return epsilon * (loss / C) + (1.0 - epsilon) * nll


def _reference(preds, target, epsilon=0.1):
    logp = jax.nn.log_softmax(preds.astype(jnp.float32), axis=-1)
    n = preds.shape[-1]
    loss = jnp.mean(-jnp.sum(logp, axis=-1))
    nll = jnp.mean(-logp[jnp.arange(preds.shape[0]), target])
    return epsilon * (loss / n) + (1.0 - epsilon) * nll


if __name__ == "__main__":
    key = jax.random.PRNGKey(0)
    k1, k2 = jax.random.split(key)

    N, C = 8, 32  # batch of 8 examples, 32 classes
    preds = jax.random.normal(k1, (N, C), dtype=jnp.float32)
    target = jax.random.randint(k2, (N,), 0, C, dtype=jnp.int32)

    out = label_smoothing_cross_entropy(preds, target, epsilon=0.1, reduction="mean")
    out = jax.block_until_ready(out)

    ref = _reference(preds, target, epsilon=0.1)
    assert jnp.allclose(out, ref, rtol=1e-5, atol=1e-5), (out, ref)

    print("KERNEL_OK")
</pallas_src>

<mosaic_0001>
module attributes {stable_mosaic.version = 11 : i64} {
  func.func @_ls_ce_kernel(%arg0: i32, %arg1: memref<8x32xf32, #tpu.memory_space<vmem>>, %arg2: memref<8x1xi32, #tpu.memory_space<vmem>>, %arg3: memref<1x8x128xf32, #tpu.memory_space<vmem>>, %arg4: memref<1x8x128xf32, #tpu.memory_space<vmem>>) attributes {dimension_semantics = [#tpu.dimension_semantics<parallel>], iteration_bounds = array<i64: 1>, scalar_prefetch = 0 : i64, scratch_operands = 0 : i64, tpu.core_type = #tpu.core_type<tc>, window_params = [{transform_indices = @transform_0, window_bounds = array<i64: 8, 32>}, {transform_indices = @transform_1, window_bounds = array<i64: 8, 1>}, {transform_indices = @transform_2, window_bounds = array<i64: 1, 8, 128>}, {transform_indices = @transform_3, window_bounds = array<i64: 1, 8, 128>}]} {
    %c0 = arith.constant 0 : index
    %c0_0 = arith.constant 0 : index
    %0 = vector.load %arg1[%c0, %c0_0] : memref<8x32xf32, #tpu.memory_space<vmem>>, vector<8x32xf32>
    %c0_1 = arith.constant 0 : index
    %c0_2 = arith.constant 0 : index
    %1 = vector.load %arg2[%c0_1, %c0_2] : memref<8x1xi32, #tpu.memory_space<vmem>>, vector<8x1xi32>
    %c8_i32 = arith.constant 8 : i32
    %2 = arith.muli %arg0, %c8_i32 : i32
    %3 = tpu.iota {dimensions = array<i32: 0>} : vector<8x1xi32>
    %4 = vector.broadcast %2 : i32 to vector<8x1xi32>
    %5 = arith.addi %4, %3 : vector<8x1xi32>
    %c8_i32_3 = arith.constant 8 : i32
    %6 = vector.broadcast %c8_i32_3 : i32 to vector<8x1xi32>
    %7 = arith.cmpi slt, %5, %6 : vector<8x1xi32>
    %cst = arith.constant dense<0xFF800000> : vector<8xf32>
    %8 = vector.multi_reduction <maximumf>, %0, %cst [1] : vector<8x32xf32> to vector<8xf32>
    %9 = vector.shape_cast %8 : vector<8xf32> to vector<8x1xf32>
    %10 = vector.broadcast %9 : vector<8x1xf32> to vector<8x32xf32>
    %11 = arith.subf %0, %10 : vector<8x32xf32>
    %12 = math.exp %11 : vector<8x32xf32>
    %cst_4 = arith.constant dense<0.000000e+00> : vector<8xf32>
    %13 = vector.multi_reduction <add>, %12, %cst_4 [1] : vector<8x32xf32> to vector<8xf32>
    %14 = vector.shape_cast %13 : vector<8xf32> to vector<8x1xf32>
    %15 = math.log %14 : vector<8x1xf32>
    %16 = arith.addf %15, %9 : vector<8x1xf32>
    %cst_5 = arith.constant dense<0.000000e+00> : vector<8xf32>
    %17 = vector.multi_reduction <add>, %0, %cst_5 [1] : vector<8x32xf32> to vector<8xf32>
    %18 = vector.shape_cast %17 : vector<8xf32> to vector<8x1xf32>
    %19 = tpu.iota {dimensions = array<i32: 1>} : vector<8x32xi32>
    %20 = vector.broadcast %1 : vector<8x1xi32> to vector<8x32xi32>
    %21 = arith.cmpi eq, %19, %20 : vector<8x32xi32>
    %cst_6 = arith.constant 0.000000e+00 : f32
    %22 = vector.broadcast %cst_6 : f32 to vector<8x32xf32>
    %23 = arith.select %21, %0, %22 : vector<8x32xi1>, vector<8x32xf32>
    %cst_7 = arith.constant dense<0.000000e+00> : vector<8xf32>
    %24 = vector.multi_reduction <add>, %23, %cst_7 [1] : vector<8x32xf32> to vector<8xf32>
    %25 = vector.shape_cast %24 : vector<8xf32> to vector<8x1xf32>
    %cst_8 = arith.constant 3.200000e+01 : f32
    %26 = vector.broadcast %cst_8 : f32 to vector<8x1xf32>
    %27 = arith.mulf %26, %16 : vector<8x1xf32>
    %28 = arith.subf %27, %18 : vector<8x1xf32>
    %29 = arith.subf %16, %25 : vector<8x1xf32>
    %cst_9 = arith.constant 0.000000e+00 : f32
    %30 = vector.broadcast %cst_9 : f32 to vector<8x1xf32>
    %31 = arith.select %7, %28, %30 : vector<8x1xi1>, vector<8x1xf32>
    %32 = vector.shape_cast %31 : vector<8x1xf32> to vector<1x8x1xf32>
    %cst_10 = arith.constant dense<0.000000e+00> : vector<1xf32>
    %33 = vector.multi_reduction <add>, %32, %cst_10 [1, 2] : vector<1x8x1xf32> to vector<1xf32>
    %34 = vector.shape_cast %33 : vector<1xf32> to vector<1x1x1xf32>
    %35 = vector.extract %34[0, 0, 0] : f32 from vector<1x1x1xf32>
    %cst_11 = arith.constant 0.000000e+00 : f32
    %36 = vector.broadcast %cst_11 : f32 to vector<8x1xf32>
    %37 = arith.select %7, %29, %36 : vector<8x1xi1>, vector<8x1xf32>
    %38 = vector.shape_cast %37 : vector<8x1xf32> to vector<1x8x1xf32>
    %cst_12 = arith.constant dense<0.000000e+00> : vector<1xf32>
    %39 = vector.multi_reduction <add>, %38, %cst_12 [1, 2] : vector<1x8x1xf32> to vector<1xf32>
    %40 = vector.shape_cast %39 : vector<1xf32> to vector<1x1x1xf32>
    %41 = vector.extract %40[0, 0, 0] : f32 from vector<1x1x1xf32>
    %cst_13 = arith.constant 0.000000e+00 : f32
    %42 = vector.broadcast %cst_13 : f32 to vector<1x8x128xf32>
    %43 = vector.broadcast %35 : f32 to vector<1x8x128xf32>
    %44 = arith.addf %42, %43 : vector<1x8x128xf32>
    %c0_14 = arith.constant 0 : index
    %c0_15 = arith.constant 0 : index
    %c0_16 = arith.constant 0 : index
    %45 = vector.load %arg3[%c0_14, %c0_15, %c0_16] : memref<1x8x128xf32, #tpu.memory_space<vmem>>, vector<1x8x128xf32>
    tpu.vector_store %arg3[%c0_14, %c0_15, %c0_16], %44 {strides = array<i32>} : memref<1x8x128xf32, #tpu.memory_space<vmem>>, vector<1x8x128xf32>,
    %cst_17 = arith.constant 0.000000e+00 : f32
    %46 = vector.broadcast %cst_17 : f32 to vector<1x8x128xf32>
    %47 = vector.broadcast %41 : f32 to vector<1x8x128xf32>
    %48 = arith.addf %46, %47 : vector<1x8x128xf32>
    %c0_18 = arith.constant 0 : index
    %c0_19 = arith.constant 0 : index
    %c0_20 = arith.constant 0 : index
    %49 = vector.load %arg4[%c0_18, %c0_19, %c0_20] : memref<1x8x128xf32, #tpu.memory_space<vmem>>, vector<1x8x128xf32>
    tpu.vector_store %arg4[%c0_18, %c0_19, %c0_20], %48 {strides = array<i32>} : memref<1x8x128xf32, #tpu.memory_space<vmem>>, vector<1x8x128xf32>,
    return
  }
  func.func @transform_0(%arg0: i32) -> (i32, i32) {
    %c0_i32 = arith.constant 0 : i32
    %c0_i32_0 = arith.constant 0 : i32
    return %arg0, %c0_i32 : i32, i32
  }
  func.func @transform_1(%arg0: i32) -> (i32, i32) {
    %c0_i32 = arith.constant 0 : i32
    %c0_i32_0 = arith.constant 0 : i32
    return %arg0, %c0_i32 : i32, i32
  }
  func.func @transform_2(%arg0: i32) -> (i32, i32, i32) {
    %c0_i32 = arith.constant 0 : i32
    %c0_i32_0 = arith.constant 0 : i32
    %c0_i32_1 = arith.constant 0 : i32
    return %arg0, %c0_i32, %c0_i32_0 : i32, i32, i32
  }
  func.func @transform_3(%arg0: i32) -> (i32, i32, i32) {
    %c0_i32 = arith.constant 0 : i32
    %c0_i32_0 = arith.constant 0 : i32
    %c0_i32_1 = arith.constant 0 : i32
    return %arg0, %c0_i32, %c0_i32_0 : i32, i32, i32
  }
}

</mosaic_0001>

<bundles_post_ra>
// kernel: tpu_custom_call.1
= control target key start
LH: loop header
LB: loop body
LE: loop exit
PB: predicated region body
PF: predicated region fallthrough
CT: control target
= control target key end

     0   :  { %9 = vsyncpa [#allocation3], 0  ;;  %vm23_vm0 = vcmask 261120   ;;  %s226_s0 = inlined_call_operand.vmem [shape: f32[8,32], index: 0, kind: input, shape index: {}]   ;;  %s227_s1 = inlined_call_operand.vmem [shape: s32[8,1], index: 1, kind: input, shape index: {}]   ;;  %s228_s2 = inlined_call_operand.hbm [shape: f32[1,8,128], index: 2, kind: output, shape index: {0}]   ;;  %s229_s3 = inlined_call_operand.hbm [shape: f32[1,8,128], index: 3, kind: output, shape index: {1}]  }
   0x1   :  { %v15_v0 = vld [vmem:[%s226_s0] sm:$0xff] }
   0x2   :  { %10 = vsyncpa [#allocation5], 0  ;;  %v24_v1 = vsel %vm23_vm0, %v15_v0, -inf  ;;  %v169_v2 = vmov 0   ;;  %v16_v3 = vld [vmem:[%s227_s1] sm:$0xff]  ;;  %v39_v7 = vlaneseq  ;;  %v36_v12 = vsel %vm23_vm0, %v15_v0, 0.0 }
   0x3   :  { %116 = vset.pattern.permute.xlu0 %v169_v2  ;;  %vm53_vm2 = vcmask 7168   ;;  %s170_s0 = smov [#allocation2]   ;;  %s171_s17 = smov [#allocation4]  }
   0x4   :  { %25 = vmax.xlane.f32.xlu0 %v24_v1  ;;  %v40_v8 = vand.u32 127, %v39_v7  ;;  %s87_s1 = sshll.u32 %s170_s0, 4  ;;  %s97_s18 = sshll.u32 %s171_s17, 4  ;;  %s88_s1 = int_to_ptr.vmem [resolvable:$true] %s87_s1  ;;  %s98_s18 = int_to_ptr.vmem [resolvable:$true] %s97_s18 }
   0x5   :  { %s121_s19 = scalar_lea.vmem %s88_s1, 128  ;;  %p126_p1 = scmp.lt.s32.totalorder %s88_s1, %s88_s1 }
   0x6   :  { %p122_p0 = scmp.ne.s32.totalorder %s88_s1, %s121_s19  ;;  %p127_p2 = scmp.lt.s32.totalorder %s121_s19, %s121_s19 }
   0x8   :  { %p128_p3 = por %p127_p2, %p126_p1 }
   0xa   :  { %p129_p4 = pnand %p128_p3, %p122_p0 }
  0x1a   :  { %42 = vperm.xlu0 %116, %v16_v3  }
  0x91   :  { %v26_v4 = vpop.xlane.xlu0 %25 }
  0x92   :  { %v27_v5 = vsub.f32 %v15_v0, %v26_v4 }
  0x94   :  { %v28_v6 = vmul.f32 1.442695, %v27_v5 }
  0x96   :  { %117 = vpow2.f32 %v28_v6 }
  0x99   :  { %v43_v9 = vpop.permute.xlu0 %42 }
  0x9a   :  { %vm44_vm1 = vcmp.eq.s32.totalorder %v40_v8, %v43_v9 }
  0x9b   :  { %v45_v13 = vsel %vm44_vm1, %v15_v0, 0.0 }
  0x9c   :  { %v46_v14 = vsel %vm23_vm0, %v45_v13, 0.0 }
  0xa0   :  { %v118_v10 = vpop.eup %117 }
  0xa1   :  { %v30_v11 = vsel %vm23_vm0, %v118_v10, 0.0 }
  0xa2   :  { %31 = vadd.xlane.f32.xlu1 %v30_v11 }
  0xa6   :  { %37 = vadd.xlane.f32.xlu1 %v36_v12 }
  0xaa   :  { %47 = vadd.xlane.f32.xlu1 %v46_v14 }
 0x12f   :  { %v32_v15 = vpop.xlane.xlu1 %31 }
 0x130   :  { %119 = vlog2.f32 %v32_v15 }
 0x133   :  { %v38_v17 = vpop.xlane.xlu1 %37 }
 0x137   :  { %v48_v21 = vpop.xlane.xlu1 %47 }
 0x13a   :  { %v120_v16 = vpop.eup %119 }
 0x13b   :  { %v34_v18 = vmul.f32 0.6931472, %v120_v16 }
 0x13d   :  { %v35_v19 = vadd.f32 %v34_v18, %v26_v4 }
 0x13f   :  { %v49_v20 = vmul.f32 32.0, %v35_v19  ;;  %v51_v23 = vsub.f32 %v35_v19, %v48_v21 }
 0x141   :  { %v50_v22 = vsub.f32 %v49_v20, %v38_v17  ;;  %v65_v25 = vsel %vm53_vm2, %v51_v23, 0.0 }
 0x143   :  { %v54_v24 = vsel %vm53_vm2, %v50_v22, 0.0 }
 0x144   :  { %55 = vadd.xlane.f32.xlu1 %v54_v24 }
 0x148   :  { %66 = vadd.xlane.f32.xlu1 %v65_v25 }
 0x1d1   :  { %v56_v26 = vpop.xlane.xlu1 %55 }
 0x1d2   :  { %v57_v27 = vrot.slane %v56_v26, 4 }
 0x1d4   :  { %v58_v28 = vadd.f32 %v57_v27, %v56_v26 }
 0x1d5   :  { %v67_v29 = vpop.xlane.xlu1 %66 }
 0x1d6   :  { %v59_v30 = vrot.slane %v58_v28, 2  ;;  %v68_v31 = vrot.slane %v67_v29, 4 }
 0x1d8   :  { %v69_v32 = vadd.f32 %v68_v31, %v67_v29  ;;  %v60_v33 = vadd.f32 %v59_v30, %v58_v28 }
 0x1da   :  { %v70_v34 = vrot.slane %v69_v32, 2  ;;  %v61_v35 = vrot.slane %v60_v33, 1 }
 0x1dc   :  { %v71_v36 = vadd.f32 %v70_v34, %v69_v32  ;;  %v62_v37 = vadd.f32 %v61_v35, %v60_v33 }
 0x1de   :  { %109 = vpush %v62_v37  ;;  %v72_v38 = vrot.slane %v71_v36, 1 }
 0x1e0   :  { %v73_v39 = vadd.f32 %v72_v38, %v71_v36 }
 0x1e2   :  { %111 = vpush %v73_v39 }
 0x20f   :  { %s110_s16 = spop %109 }
 0x210   :  { %v75_v40 = vstv %s110_s16 }
 0x211   :  { %77 = vst [vmem:[#allocation2] sm:$0xff] %v75_v40 }
 0x212   :  { %132 = shalt.err (!%p129_p4)
}
 0x213   :  { %s133_s22 = scalar_lea.hbm %s228_s2, 128 }
 0x214   :  { %p134_p5 = scmp.ne.s32.totalorder %s228_s2, %s133_s22  ;;  %p137_p6 = scmp.lt.u32.totalorder %s133_s22, %s228_s2 }
 0x216   :  { %p139_p7 = pnand %p137_p6, %p134_p5 }
 0x218   :  { %142 = shalt.err (!%p139_p7)
}
 0x219   :  { %90 = dma.vmem_to_hbm [thread:$0]  %s88_s1, 128, %s228_s2, [#allocation3]  }
 0x21a   :  { %s112_s29 = spop %111  ;;  %s143_s30 = scalar_lea.vmem %s98_s18, 128 }
 0x21b   :  { %v78_v41 = vstv %s112_s29  ;;  %p144_p8 = scmp.ne.s32.totalorder %s98_s18, %s143_s30  ;;  %p148_p9 = scmp.lt.s32.totalorder %s98_s18, %s98_s18 }
 0x21c   :  { %80 = vst [vmem:[#allocation4] sm:$0xff] %v78_v41  ;;  %p149_p10 = scmp.lt.s32.totalorder %s143_s30, %s143_s30 }
 0x21e   :  { %p150_p11 = por %p149_p10, %p148_p9 }
 0x220   :  { %p151_p12 = pnand %p150_p11, %p144_p8 }
 0x222   :  { %154 = shalt.err (!%p151_p12)
}
 0x223   :  { %s155_s6 = scalar_lea.hbm %s229_s3, 128 }
 0x224   :  { %p156_p13 = scmp.ne.s32.totalorder %s229_s3, %s155_s6  ;;  %p159_p0 = scmp.lt.u32.totalorder %s155_s6, %s229_s3 }
 0x226   :  { %p161_p1 = pnand %p159_p0, %p156_p13 }
 0x228   :  { %164 = shalt.err (!%p161_p1)
}
 0x229   :  { %100 = dma.vmem_to_hbm [thread:$0]  %s98_s18, 128, %s229_s3, [#allocation5]  }
 0x22a   :  { %165 = dma.done.wait [#allocation3], 128  }
 0x22b   :  { %166 = vsyncadd [#allocation3], 4294967168 }
 0x22c   :  { %167 = dma.done.wait [#allocation5], 128  }
 0x22d   :  { %168 = vsyncadd [#allocation5], 4294967168 }
 0x22e   :  { %107 = vsyncpa [#allocation3], 1 }
 0x22f   :  { %108 = vsyncpa [#allocation5], 1 }

</bundles_post_ra>
